<compile_context>
chip_gen: v7x
topology: tpu7x:2x2x1
jax: 0.10.0
libtpu: 0.0.40
codegen_flags: <defaults>
</compile_context>

<pallas_src>
import functools

import jax
import jax.numpy as jnp
from jax.experimental import pallas as pl
from jax.experimental.pallas import tpu as pltpu


def _round_up(x: int, m: int) -> int:
    return ((x + m - 1) // m) * m


def score_u_kernel(x_ref, small_ref, w32_ref, w4_ref, out_ref, *,
                   d_u: int, hidden: int):
    f32 = jnp.float32

    def silu(x):
        # sigmoid(x) = 0.5*(1 + tanh(x/2)) -> a single EUP push per element
        # (vs exp + reciprocal), identical math to x*sigmoid(x).
        return 0.5 * x * (1.0 + jnp.tanh(0.5 * x))

    # ---- resident packed small parameters: [w1 | b1 | b23 | b4 | W3u] ----
    s = small_ref[...].astype(f32)                 # (max(H,d_u), 4 + d_u)
    w1 = s[:hidden, 0:1]                           # (H, 1)  Linear(1,H) weight
    b1 = s[:hidden, 1:2]                           # (H, 1)
    b23 = s[:hidden, 2:3]                          # (H, 1)  = W3t@b2 + b3
    b4 = s[:d_u, 3:4]                              # (d_u, 1)
    w3u = s[:hidden, 4:4 + d_u]                    # (H, d_u)

    # ---- streamed lane-dense input slab: rows = [u^T ; tau^T] ----
    x = x_ref[...].astype(f32)                     # (d_u + 1, tb), batch on lanes
    u = x[:d_u, :]                                 # (d_u, tb)
    tau = x[d_u:d_u + 1, :]                        # (1, tb)

    # time_mlp[0] + SiLU: K=1 -> VPU outer product, MXU stays free for the big GEMM.
    h1 = silu(w1 * tau + b1)                       # (H, tb)

    # Folded GEMM: W32 = W3t @ W2 absorbs time_mlp[2] and trunk[0]'s t_emb half.
    mx = w32_ref.dtype                             # f32, or bf16 fast path
    acc = jnp.dot(w32_ref[...], h1.astype(mx), preferred_element_type=f32)
    # trunk[0]'s u half: tiny K=d_u GEMM on the (otherwise idle) MXU, kept in f32.
    acc = acc + jnp.dot(w3u, u, preferred_element_type=f32)
    h2 = silu(acc + b23)                           # (H, tb)

    # trunk[2]: Linear(H, d_u); output tile is lane-dense (d_u, tb).
    out = jnp.dot(w4_ref[...], h2.astype(mx), preferred_element_type=f32) + b4
    out_ref[...] = out.astype(out_ref.dtype)


def init_params(d_u: int, hidden: int = 128, dtype=jnp.float32):
    """Deterministic synthetic parameters, torch-style (out_features, in_features)."""
    key = jax.random.PRNGKey(0)
    ks = jax.random.split(key, 8)

    def lin(kw, kb, fan_in, fan_out):
        bound = 1.0 / float(fan_in) ** 0.5
        w = jax.random.uniform(kw, (fan_out, fan_in), dtype, -bound, bound)
        b = jax.random.uniform(kb, (fan_out,), dtype, -bound, bound)
        return w, b

    w1, b1 = lin(ks[0], ks[1], 1, hidden)               # time_mlp[0]
    w2, b2 = lin(ks[2], ks[3], hidden, hidden)          # time_mlp[2]
    w3, b3 = lin(ks[4], ks[5], d_u + hidden, hidden)    # trunk[0]
    w4, b4 = lin(ks[6], ks[7], hidden, d_u)             # trunk[2]

    return {
        "w1": w1, "b1": b1,
        "w2": w2, "b2": b2,
        "w3u": w3[:, :d_u], "w3t": w3[:, d_u:], "b3": b3,
        "w4": w4, "b4": b4,
    }


def score_u(u, tau, params, *, tb: int = 2048, compute_dtype=jnp.float32):
    """Forward pass.

    tb            : batch tile along the lane axis (multiple of 128); sweep 1024-8192.
    compute_dtype : MXU operand dtype for the two folded GEMMs.  jnp.bfloat16 is
                    valid on v5e/v6e/v7x (all take bf16 MXU operands); accumulation
                    and all VPU/EUP math stay in f32 regardless.
    """
    B, d_u = u.shape
    hidden = params["w2"].shape[0]
    out_dtype = u.dtype
    f32 = jnp.float32
    itemsize = jnp.dtype(compute_dtype).itemsize

    # ---- fold W3t@W2 / W3t@b2+b3 in f32, then cast MXU operands ----
    w2 = params["w2"].astype(f32)
    w3t = params["w3t"].astype(f32)
    w32 = (w3t @ w2).astype(compute_dtype)               # (H, H)
    b23 = w3t @ params["b2"].astype(f32) + params["b3"].astype(f32)
    w4 = params["w4"].astype(compute_dtype)              # (d_u, H)

    # ---- pack all tiny parameters into ONE resident f32 slab (one startup DMA) ----
    hb = max(hidden, d_u)
    small = (jnp.zeros((hb, 4 + d_u), f32)
             .at[:hidden, 0].set(params["w1"].astype(f32)[:, 0])
             .at[:hidden, 1].set(params["b1"].astype(f32))
             .at[:hidden, 2].set(b23)
             .at[:d_u, 3].set(params["b4"].astype(f32))
             .at[:hidden, 4:4 + d_u].set(params["w3u"].astype(f32)))

    # ---- lane-dense streamed input: one slab [u ; tau]^T, batch on lanes ----
    x_t = jnp.concatenate([u.astype(f32), tau.astype(f32)], axis=-1).T  # (d_u+1, B)

    # ---- batch tiling: multiple of 128 lanes; keep >=2 tiles for v7x's 2 TCs ----
    tb = max(128, (int(tb) // 128) * 128)
    B_pad = _round_up(B, 128)
    tb = min(tb, B_pad)
    if B_pad // tb < 2 and B_pad >= 256:
        tb = _round_up(B_pad // 2, 128)                  # 2 tiles -> both TensorCores busy
    B_pad = _round_up(B, tb)
    if B_pad != B:
        # Padded lanes see u=0, tau=0 -> compute silu(b1) etc.; sliced off below.
        x_t = jnp.pad(x_t, ((0, 0), (0, B_pad - B)))
    grid = (B_pad // tb,)

    def resident(a):
        return pl.BlockSpec(a.shape, lambda i: (0, 0))

    in_specs = [
        pl.BlockSpec((d_u + 1, tb), lambda i: (0, i)),   # [u;tau]^T streamed, lane-dense
        resident(small), resident(w32), resident(w4),
    ]
    out_specs = pl.BlockSpec((d_u, tb), lambda i: (0, i))

    # ---- rough per-tile VMEM estimate; only raise the scoped limit when needed
    #      (v5e defaults to 16 MiB; v6e/v7x to 32 MiB) ----
    est_vmem_bytes = (4 * tb * (3 * hidden + 2 * (d_u + 1) + 2 * d_u)
                      + 4 * small.size + itemsize * (w32.size + w4.size))
    cp_kwargs = dict(dimension_semantics=("parallel",))
    if est_vmem_bytes > (16 << 20):
        cp_kwargs["vmem_limit_bytes"] = int(2 * est_vmem_bytes)
    compiler_params = pltpu.CompilerParams(**cp_kwargs)

    # ---- scheduler hint (post-fold FLOP count) ----
    flops = 2 * B_pad * hidden * (1 + hidden + 2 * d_u)
    transcendentals = 2 * B_pad * hidden                 # two tanh-SiLUs over H
    bytes_accessed = int(x_t.size * 4 + d_u * B_pad * 4 + small.size * 4
                         + (w32.size + w4.size) * itemsize)

    kernel = functools.partial(score_u_kernel, d_u=d_u, hidden=hidden)

    out_t = pl.pallas_call(
        kernel,
        out_shape=jax.ShapeDtypeStruct((d_u, B_pad), jnp.float32),
        grid=grid,
        in_specs=in_specs,
        out_specs=out_specs,
        compiler_params=compiler_params,
        cost_estimate=pl.CostEstimate(
            flops=flops, transcendentals=transcendentals,
            bytes_accessed=bytes_accessed),
    )(x_t, small, w32, w4)

    return out_t[:, :B].T.astype(out_dtype)


def score_u_ref(u, tau, params):
    """Pure-JAX reference (torch-oriented weights, unfolded) for correctness check."""
    h1 = jax.nn.silu(tau @ params["w1"].T + params["b1"])
    t_emb = h1 @ params["w2"].T + params["b2"]
    h = jnp.concatenate([u, t_emb], axis=-1)
    w3 = jnp.concatenate([params["w3u"], params["w3t"]], axis=1)
    h2 = jax.nn.silu(h @ w3.T + params["b3"])
    return h2 @ params["w4"].T + params["b4"]


if __name__ == "__main__":
    d_u, hidden = 4, 32
    params = init_params(d_u, hidden)

    key = jax.random.PRNGKey(0)
    ku1, kt1, ku2, kt2 = jax.random.split(key, 4)

    # (1) tiny batch: exercises the pad-to-128-lanes path (single tile, grid=(1,)).
    B1 = 8
    u1 = jax.random.normal(ku1, (B1, d_u), jnp.float32)
    tau1 = jax.random.uniform(kt1, (B1, 1), jnp.float32)
    out1 = jax.block_until_ready(score_u(u1, tau1, params))
    ref1 = score_u_ref(u1, tau1, params)
    assert out1.shape == (B1, d_u)
    assert jnp.allclose(out1, ref1, atol=1e-4, rtol=1e-4), (
        f"max err {float(jnp.max(jnp.abs(out1 - ref1)))}")

    # (2) mid batch, default tb: the clamp splits it into 2 tiles (v7x megacore path).
    B2 = 384
    u2 = jax.random.normal(ku2, (B2, d_u), jnp.float32)
    tau2 = jax.random.uniform(kt2, (B2, 1), jnp.float32)
    out2 = jax.block_until_ready(score_u(u2, tau2, params))
    ref2 = score_u_ref(u2, tau2, params)
    assert out2.shape == (B2, d_u)
    assert jnp.allclose(out2, ref2, atol=1e-4, rtol=1e-4), (
        f"max err {float(jnp.max(jnp.abs(out2 - ref2)))}")

    # (3) explicit small-tile grid (3 x 128 lanes), f32.
    out3 = jax.block_until_ready(score_u(u2, tau2, params, tb=128))
    assert jnp.allclose(out3, ref2, atol=1e-4, rtol=1e-4), (
        f"max err {float(jnp.max(jnp.abs(out3 - ref2)))}")

    # (4) bf16-MXU fast path (valid on v5e/v6e/v7x): f32 accumulation, looser tol.
    out4 = jax.block_until_ready(
        score_u(u2, tau2, params, compute_dtype=jnp.bfloat16))
    assert float(jnp.max(jnp.abs(out4 - ref2))) < 5e-2, (
        f"bf16 max err {float(jnp.max(jnp.abs(out4 - ref2)))}")

    print("KERNEL_OK")
</pallas_src>

<mosaic_0001>
module attributes {stable_mosaic.version = 11 : i64} {
  func.func @score_u_kernel(%arg0: i32, %arg1: memref<5x128xf32, #tpu.memory_space<vmem>>, %arg2: memref<32x8xf32, #tpu.memory_space<vmem>>, %arg3: memref<32x32xf32, #tpu.memory_space<vmem>>, %arg4: memref<4x32xf32, #tpu.memory_space<vmem>>, %arg5: memref<4x128xf32, #tpu.memory_space<vmem>>) attributes {dimension_semantics = [#tpu.dimension_semantics<parallel>], iteration_bounds = array<i64: 1>, scalar_prefetch = 0 : i64, scratch_operands = 0 : i64, tpu.core_type = #tpu.core_type<tc>, window_params = [{transform_indices = @transform_0, window_bounds = array<i64: 5, 128>}, {pipeline_mode = #tpu.pipeline_mode<synchronous>, transform_indices = @transform_1, window_bounds = array<i64: 32, 8>}, {pipeline_mode = #tpu.pipeline_mode<synchronous>, transform_indices = @transform_2, window_bounds = array<i64: 32, 32>}, {pipeline_mode = #tpu.pipeline_mode<synchronous>, transform_indices = @transform_3, window_bounds = array<i64: 4, 32>}, {transform_indices = @transform_4, window_bounds = array<i64: 4, 128>}]} {
    %c0 = arith.constant 0 : index
    %c0_0 = arith.constant 0 : index
    %0 = vector.load %arg2[%c0, %c0_0] : memref<32x8xf32, #tpu.memory_space<vmem>>, vector<32x8xf32>
    %1 = vector.extract_strided_slice %0 {offsets = [0, 0], sizes = [32, 1], strides = [1, 1]} : vector<32x8xf32> to vector<32x1xf32>
    %2 = vector.extract_strided_slice %0 {offsets = [0, 1], sizes = [32, 1], strides = [1, 1]} : vector<32x8xf32> to vector<32x1xf32>
    %3 = vector.extract_strided_slice %0 {offsets = [0, 2], sizes = [32, 1], strides = [1, 1]} : vector<32x8xf32> to vector<32x1xf32>
    %4 = vector.extract_strided_slice %0 {offsets = [0, 3], sizes = [4, 1], strides = [1, 1]} : vector<32x8xf32> to vector<4x1xf32>
    %5 = vector.extract_strided_slice %0 {offsets = [0, 4], sizes = [32, 4], strides = [1, 1]} : vector<32x8xf32> to vector<32x4xf32>
    %c0_1 = arith.constant 0 : index
    %c0_2 = arith.constant 0 : index
    %6 = vector.load %arg1[%c0_1, %c0_2] : memref<5x128xf32, #tpu.memory_space<vmem>>, vector<5x128xf32>
    %7 = vector.extract_strided_slice %6 {offsets = [0, 0], sizes = [4, 128], strides = [1, 1]} : vector<5x128xf32> to vector<4x128xf32>
    %8 = vector.extract_strided_slice %6 {offsets = [4, 0], sizes = [1, 128], strides = [1, 1]} : vector<5x128xf32> to vector<1x128xf32>
    %9 = vector.broadcast %1 : vector<32x1xf32> to vector<32x128xf32>
    %10 = vector.broadcast %8 : vector<1x128xf32> to vector<32x128xf32>
    %11 = arith.mulf %9, %10 : vector<32x128xf32>
    %12 = vector.broadcast %2 : vector<32x1xf32> to vector<32x128xf32>
    %13 = arith.addf %11, %12 : vector<32x128xf32>
    %cst = arith.constant 5.000000e-01 : f32
    %14 = vector.broadcast %cst : f32 to vector<32x128xf32>
    %15 = arith.mulf %14, %13 : vector<32x128xf32>
    %cst_3 = arith.constant 5.000000e-01 : f32
    %16 = vector.broadcast %cst_3 : f32 to vector<32x128xf32>
    %17 = arith.mulf %16, %13 : vector<32x128xf32>
    %18 = math.tanh %17 : vector<32x128xf32>
    %cst_4 = arith.constant 1.000000e+00 : f32
    %19 = vector.broadcast %cst_4 : f32 to vector<32x128xf32>
    %20 = arith.addf %19, %18 : vector<32x128xf32>
    %21 = arith.mulf %15, %20 : vector<32x128xf32>
    %c0_5 = arith.constant 0 : index
    %c0_6 = arith.constant 0 : index
    %22 = vector.load %arg3[%c0_5, %c0_6] : memref<32x32xf32, #tpu.memory_space<vmem>>, vector<32x32xf32>
    %cst_7 = arith.constant dense<0.000000e+00> : vector<32x128xf32>
    %23 = tpu.matmul %22, %21, %cst_7 {dimension_numbers = #tpu.dot_dimension_numbers<[1], [0], [0], [1], [0, 0, 1, 1], [], []>} : vector<32x32xf32>, vector<32x128xf32>, vector<32x128xf32> -> vector<32x128xf32>
    %cst_8 = arith.constant dense<0.000000e+00> : vector<32x128xf32>
    %24 = tpu.matmul %5, %7, %cst_8 {dimension_numbers = #tpu.dot_dimension_numbers<[1], [0], [0], [1], [0, 0, 1, 1], [], []>} : vector<32x4xf32>, vector<4x128xf32>, vector<32x128xf32> -> vector<32x128xf32>
    %25 = arith.addf %23, %24 : vector<32x128xf32>
    %26 = vector.broadcast %3 : vector<32x1xf32> to vector<32x128xf32>
    %27 = arith.addf %25, %26 : vector<32x128xf32>
    %cst_9 = arith.constant 5.000000e-01 : f32
    %28 = vector.broadcast %cst_9 : f32 to vector<32x128xf32>
    %29 = arith.mulf %28, %27 : vector<32x128xf32>
    %cst_10 = arith.constant 5.000000e-01 : f32
    %30 = vector.broadcast %cst_10 : f32 to vector<32x128xf32>
    %31 = arith.mulf %30, %27 : vector<32x128xf32>
    %32 = math.tanh %31 : vector<32x128xf32>
    %cst_11 = arith.constant 1.000000e+00 : f32
    %33 = vector.broadcast %cst_11 : f32 to vector<32x128xf32>
    %34 = arith.addf %33, %32 : vector<32x128xf32>
    %35 = arith.mulf %29, %34 : vector<32x128xf32>
    %c0_12 = arith.constant 0 : index
    %c0_13 = arith.constant 0 : index
    %36 = vector.load %arg4[%c0_12, %c0_13] : memref<4x32xf32, #tpu.memory_space<vmem>>, vector<4x32xf32>
    %cst_14 = arith.constant dense<0.000000e+00> : vector<4x128xf32>
    %37 = tpu.matmul %36, %35, %cst_14 {dimension_numbers = #tpu.dot_dimension_numbers<[1], [0], [0], [1], [0, 0, 1, 1], [], []>} : vector<4x32xf32>, vector<32x128xf32>, vector<4x128xf32> -> vector<4x128xf32>
    %38 = vector.broadcast %4 : vector<4x1xf32> to vector<4x128xf32>
    %39 = arith.addf %37, %38 : vector<4x128xf32>
    %c0_15 = arith.constant 0 : index
    %c0_16 = arith.constant 0 : index
    %40 = vector.load %arg5[%c0_15, %c0_16] : memref<4x128xf32, #tpu.memory_space<vmem>>, vector<4x128xf32>
    tpu.vector_store %arg5[%c0_15, %c0_16], %39 {strides = array<i32>} : memref<4x128xf32, #tpu.memory_space<vmem>>, vector<4x128xf32>,
    return
  }
  func.func @transform_0(%arg0: i32) -> (i32, i32) {
    %c0_i32 = arith.constant 0 : i32
    %c0_i32_0 = arith.constant 0 : i32
    return %c0_i32, %arg0 : i32, i32
  }
  func.func @transform_1(%arg0: i32) -> (i32, i32) {
    %c0_i32 = arith.constant 0 : i32
    %c0_i32_0 = arith.constant 0 : i32
    %c0_i32_1 = arith.constant 0 : i32
    return %c0_i32, %c0_i32_0 : i32, i32
  }
  func.func @transform_2(%arg0: i32) -> (i32, i32) {
    %c0_i32 = arith.constant 0 : i32
    %c0_i32_0 = arith.constant 0 : i32
    %c0_i32_1 = arith.constant 0 : i32
    return %c0_i32, %c0_i32_0 : i32, i32
  }
  func.func @transform_3(%arg0: i32) -> (i32, i32) {
    %c0_i32 = arith.constant 0 : i32
    %c0_i32_0 = arith.constant 0 : i32
    %c0_i32_1 = arith.constant 0 : i32
    return %c0_i32, %c0_i32_0 : i32, i32
  }
  func.func @transform_4(%arg0: i32) -> (i32, i32) {
    %c0_i32 = arith.constant 0 : i32
    %c0_i32_0 = arith.constant 0 : i32
    return %c0_i32, %arg0 : i32, i32
  }
}

</mosaic_0001>

<bundles_post_ra>
// kernel: tpu_custom_call.1
= control target key start
LH: loop header
LB: loop body
LE: loop exit
PB: predicated region body
PF: predicated region fallthrough
CT: control target
= control target key end

     0   :  { %v560_v1 = vmov 1   ;;  %v561_v2 = vmov 0   ;;  %s652_s0 = inlined_call_operand.vmem [shape: f32[5,128], index: 0, kind: input, shape index: {}]   ;;  %s653_s1 = inlined_call_operand.vmem [shape: f32[32,8], index: 1, kind: input, shape index: {}]   ;;  %s654_s2 = inlined_call_operand.vmem [shape: f32[32,32], index: 2, kind: input, shape index: {}]   ;;  %s655_s3 = inlined_call_operand.vmem [shape: f32[4,32], index: 3, kind: input, shape index: {}]   ;;  %s656_s4 = inlined_call_operand.hbm [shape: f32[4,128], index: 4, kind: output, shape index: {}]  }
   0x1   :  { %v597_v0 = vld [vmem:[%s653_s1] sm:$0xff]  ;;  %513 = vset.pattern.permute.xlu1 %v560_v1  ;;  %512 = vset.pattern.permute.xlu0 %v561_v2 }
   0x2   :  { %9 = vsyncpa [#allocation3], 0  ;;  %52 = vperm.xlu1 %513, %v597_v0   ;;  %25 = vperm.xlu0 %512, %v597_v0   ;;  %v19_v3 = vld [vmem:[%s653_s1 + $0x8] sm:$0xff]  ;;  %v20_v4 = vld [vmem:[%s653_s1 + $0x10] sm:$0xff]  ;;  %s562_s23 = smov 124   ;;  %vm108_vm0 = vcmask 1043456   ;;  %v43_v9 = vlaneseq }
   0x3   :  { %v21_v5 = vld [vmem:[%s653_s1 + $0x18] sm:$0xff]  ;;  %v22_v6 = vld [vmem:[%s652_s0] sm:$0x1f]  ;;  %vm197_vm1 = vcmask 261120   ;;  %v563_v8 = vmov 2   ;;  %vm99_vm2 = vcmask 31744  }
   0x4   :  { %452 = vmatprep.subr.msk.mxu1 %vm108_vm0, %v22_v6  ;;  %v87_v7 = vld [vmem:[%s654_s2] sm:$0xff]  ;;  %v44_v10 = vshrl.u32 %v43_v9, 7  ;;  %v88_v51 = vld [vmem:[%s654_s2 + $0x8] sm:$0xff]  ;;  %v89_v52 = vld [vmem:[%s654_s2 + $0x10] sm:$0xff]  ;;  %v564_v54 = vmov 0.0|0.0   ;;  %vm565_vm3 = vmmov 0  }
   0x5   :  { %453 = vmatpush3.msk.msra.mxu1 %vm108_vm0, %v22_v6  ;;  %468 = vmatprep.mubr.msk.f32.mxu0 %vm197_vm1, %v87_v7  ;;  %v90_v53 = vld [vmem:[%s654_s2 + $0x18] sm:$0xff]  ;;  %v566_v55 = vmov 0.0   ;;  %v567_v56 = vmov 3   ;;  %s568_s7 = smov [#allocation2]  }
   0x6   :  { %56 = vperm.xlu1 %513, %v19_v3   ;;  %30 = vperm.xlu0 %512, %v19_v3   ;;  %v45_v11 = vsub.s32 4, %v44_v10  ;;  %s416_s8 = sshll.u32 %s568_s7, 4  ;;  %s417_s8 = int_to_ptr.vmem [resolvable:$true] %s416_s8 }
   0x7   :  { %493 = vmatprep.subr.bf16.mxu1 %v564_v54  ;;  %s536_s9 = scalar_lea.vmem %s417_s8, 64  ;;  %p541_p1 = scmp.lt.s32.totalorder %s417_s8, %s417_s8 }
   0x8   :  { %v46_v12 = vrot.slane %v22_v6, %v45_v11  ;;  %p537_p0 = scmp.ne.s32.totalorder %s417_s8, %s536_s9  ;;  %p542_p2 = scmp.lt.s32.totalorder %s536_s9, %s536_s9 }
   0xa   :  { %514 = vset.pattern.permute.xlu1 %v561_v2  ;;  %35 = vperm.xlu0 %512, %v20_v4   ;;  %p543_p3 = por %p542_p2, %p541_p1 }
   0xb   :  { %40 = vperm.xlu1 %514, %v21_v5  }
   0xc   :  { %p544_p4 = pnand %p543_p3, %p537_p0 }
   0xe   :  { %515 = vset.pattern.permute.xlu0 %v560_v1 }
   0xf   :  { %516 = vset.pattern.permute.xlu1 %v560_v1  ;;  %60 = vperm.xlu0 %515, %v20_v4  }
  0x10   :  { %64 = vperm.xlu1 %516, %v21_v5  }
  0x13   :  { %93 = vrot.lane.b32.xlu0 %v19_v3, %s562_s23 }
  0x14   :  { %91 = vrot.lane.b32.xlu1 %v597_v0, %s562_s23  ;;  %518 = vset.pattern.permute.xlu0 %v563_v8 }
  0x15   :  { %517 = vset.pattern.permute.xlu1 %v563_v8 }
  0x17   :  { %97 = vrot.lane.b32.xlu0 %v21_v5, %s562_s23 }
  0x18   :  { %95 = vrot.lane.b32.xlu1 %v20_v4, %s562_s23 }
  0x1b   :  { %300 = vperm.xlu0 %518, %v19_v3  }
  0x1c   :  { %296 = vperm.xlu1 %517, %v597_v0  }
  0x1f   :  { %519 = vset.pattern.permute.xlu0 %v567_v56 }
  0x20   :  { %304 = vperm.xlu1 %517, %v20_v4   ;;  %333 = vperm.xlu0 %519, %v597_v0  }
  0x24   :  { %308 = vperm.xlu1 %517, %v21_v5  }
  0x81   :  { %v53_v13 = vpop.permute.xlu1 %52  ;;  %v26_v14 = vpop.permute.xlu0 %25 }
  0x82   :  { %v47_v15 = vmul.f32 %v46_v12, %v26_v14 }
  0x84   :  { %v67_v16 = vadd.f32 %v53_v13, %v47_v15 }
  0x85   :  { %v57_v17 = vpop.permute.xlu1 %56  ;;  %v31_v18 = vpop.permute.xlu0 %30 }
  0x86   :  { %v71_v19 = vmul.f32 0.5, %v67_v16  ;;  %v48_v20 = vmul.f32 %v46_v12, %v31_v18 }
  0x88   :  { %520 = vtanh.f32 %v71_v19  ;;  %v68_v21 = vadd.f32 %v57_v17, %v48_v20 }
  0x89   :  { %v36_v22 = vpop.permute.xlu0 %35 }
  0x8a   :  { %v72_v23 = vmul.f32 0.5, %v68_v21  ;;  %v41_v24 = vpop.permute.xlu1 %40  ;;  %v49_v25 = vmul.f32 %v46_v12, %v36_v22 }
  0x8b   :  { %v50_v26 = vmul.f32 %v46_v12, %v41_v24 }
  0x8c   :  { %522 = vtanh.f32 %v72_v23 }
  0x8e   :  { %v61_v27 = vpop.permute.xlu0 %60 }
  0x8f   :  { %v69_v28 = vadd.f32 %v61_v27, %v49_v25  ;;  %v65_v29 = vpop.permute.xlu1 %64 }
  0x90   :  { %v70_v30 = vadd.f32 %v65_v29, %v50_v26 }
  0x91   :  { %v73_v31 = vmul.f32 0.5, %v69_v28 }
  0x92   :  { %v521_v32 = vpop.eup %520  ;;  %v74_v33 = vmul.f32 0.5, %v70_v30  ;;  %v94_v34 = vpop.permute.xlu0 %93 }
  0x93   :  { %524 = vtanh.f32 %v73_v31  ;;  %v92_v35 = vpop.permute.xlu1 %91  ;;  %v79_v36 = vadd.f32 1.0, %v521_v32 }
  0x94   :  { %526 = vtanh.f32 %v74_v33  ;;  %454 = vmatprep.mubr.msk.f32.mxu1 %vm99_vm2, %v92_v35 }
  0x95   :  { %455 = vmatmul.mubr.msk.f32.vlgmr.msra.gmra.mrb[0].mxu1 %vm99_vm2, %v94_v34  ;;  %v83_v41 = vmul.f32 %v79_v36, %v71_v19 }
  0x96   :  { %v523_v37 = vpop.eup %522  ;;  %v98_v38 = vpop.permute.xlu0 %97 }
  0x97   :  { %v80_v39 = vadd.f32 1.0, %v523_v37  ;;  %v96_v40 = vpop.permute.xlu1 %95 }
  0x98   :  { %457 = vmatprep.mubr.msk.f32.mxu1 %vm99_vm2, %v96_v40 }
  0x99   :  { %v84_v42 = vmul.f32 %v80_v39, %v72_v23  ;;  %458 = vmatmul.mubr.msk.f32.gmra.mrb[2].mxu1 %vm99_vm2, %v98_v38 }
  0x9a   :  { %482 = vmatprep.mubr.msk.f32.mxu1 %vm565_vm3, %v566_v55  ;;  %v301_v1 = vpop.permute.xlu0 %300 }
  0x9b   :  { %v485_v43 = vpack.c.bf16 %v84_v42, %v83_v41  ;;  %v297_v61 = vpop.permute.xlu1 %296 }
  0x9d   :  { %v525_v44 = vpop.eup %524  ;;  %486 = vmatprep.subr.bf16.mxu0 %v485_v43 }
  0x9e   :  { %v527_v45 = vpop.eup %526  ;;  %v81_v46 = vadd.f32 1.0, %v525_v44  ;;  %488 = vmatpush3.bf16.msra.mxu0 %v485_v43 }
  0x9f   :  { %v82_v47 = vadd.f32 1.0, %v527_v45  ;;  %v305_v62 = vpop.permute.xlu1 %304  ;;  %v334_v32 = vpop.permute.xlu0 %333 }
  0xa0   :  { %v85_v48 = vmul.f32 %v81_v46, %v73_v31  ;;  %v331_v31 = vld [vmem:[%s655_s3] sm:$0xf] }
  0xa1   :  { %v86_v49 = vmul.f32 %v82_v47, %v74_v33 }
  0xa3   :  { %v489_v50 = vpack.c.bf16 %v86_v49, %v85_v48  ;;  %v309_v11 = vpop.permute.xlu1 %308 }
  0xa5   :  { %490 = vmatprep.subr.bf16.mxu0 %v489_v50 }
  0xa6   :  { %492 = vmatpush3.bf16.msra.mxu0 %v489_v50 }
  0xa9   :  { %469 = vmatmul.mubr.msk.f32.vlgmr.msra.gmra.mrb[0].mxu0 %vm197_vm1, %v88_v51 }
  0xaa   :  { %471 = vmatprep.mubr.msk.f32.mxu0 %vm197_vm1, %v89_v52 }
  0xad   :  { %472 = vmatmul.mubr.msk.f32.gmra.mrb[2].mxu0 %vm197_vm1, %v90_v53 }
 0x168   :  { %v456_v57 = vpop.f32.mrb[0].mxu1 }
 0x169   :  { %v178_v58 = vpop.f32.mrb[1].mxu1 }
 0x16c   :  { %v459_v59 = vpop.f32.mrb[2].mxu1 }
 0x16d   :  { %v188_v60 = vpop.f32.mrb[3].mxu1 }
 0x17c   :  { %v470_v63 = vpop.f32.mrb[0].mxu0 }
 0x17d   :  { %v282_v2 = vadd.f32 %v470_v63, %v456_v57  ;;  %v276_v3 = vpop.f32.mrb[1].mxu0 }
 0x17e   :  { %v277_v4 = vadd.f32 %v276_v3, %v178_v58 }
 0x17f   :  { %v312_v5 = vadd.f32 %v301_v1, %v282_v2 }
 0x180   :  { %v311_v6 = vadd.f32 %v297_v61, %v277_v4  ;;  %v473_v7 = vpop.f32.mrb[2].mxu0 }
 0x181   :  { %v316_v8 = vmul.f32 0.5, %v312_v5  ;;  %v292_v9 = vadd.f32 %v473_v7, %v459_v59  ;;  %v286_v10 = vpop.f32.mrb[3].mxu0 }
 0x182   :  { %v315_v12 = vmul.f32 0.5, %v311_v6  ;;  %v287_v0 = vadd.f32 %v286_v10, %v188_v60 }
 0x183   :  { %528 = vtanh.f32 %v316_v8  ;;  %v314_v13 = vadd.f32 %v309_v11, %v292_v9 }
 0x184   :  { %530 = vtanh.f32 %v315_v12  ;;  %v313_v14 = vadd.f32 %v305_v62, %v287_v0 }
 0x185   :  { %v318_v15 = vmul.f32 0.5, %v314_v13 }
 0x186   :  { %v317_v16 = vmul.f32 0.5, %v313_v14 }
 0x187   :  { %532 = vtanh.f32 %v318_v15 }
 0x188   :  { %534 = vtanh.f32 %v317_v16 }
 0x18d   :  { %v529_v17 = vpop.eup %528 }
 0x18e   :  { %v531_v18 = vpop.eup %530  ;;  %v324_v19 = vadd.f32 1.0, %v529_v17 }
 0x18f   :  { %v323_v20 = vadd.f32 1.0, %v531_v18 }
 0x190   :  { %v328_v21 = vmul.f32 %v324_v19, %v316_v8 }
 0x191   :  { %v533_v22 = vpop.eup %532  ;;  %v327_v23 = vmul.f32 %v323_v20, %v315_v12 }
 0x192   :  { %v535_v24 = vpop.eup %534  ;;  %v326_v25 = vadd.f32 1.0, %v533_v22 }
 0x193   :  { %v494_v26 = vpack.c.bf16 %v328_v21, %v327_v23  ;;  %v325_v27 = vadd.f32 1.0, %v535_v24 }
 0x194   :  { %v330_v28 = vmul.f32 %v326_v25, %v318_v15 }
 0x195   :  { %v329_v29 = vmul.f32 %v325_v27, %v317_v16  ;;  %495 = vmatpush3.bf16.msra.mxu1 %v494_v26 }
 0x196   :  { %496 = vmatprep.subr.bf16.mxu1 %v564_v54 }
 0x197   :  { %v497_v30 = vpack.c.bf16 %v330_v28, %v329_v29 }
 0x199   :  { %498 = vmatpush3.bf16.msra.mxu1 %v497_v30 }
 0x19c   :  { %483 = vmatmul.mubr.msk.f32.vlgmr.msra.gmra.mrb[4].mxu1 %vm197_vm1, %v331_v31 }
 0x26f   :  { %v405_v33 = vpop.f32.mrb[4].mxu1 }
 0x270   :  { %v484_v34 = vpop.f32.mrb[5].mxu1  ;;  %v406_v35 = vadd.f32 %v405_v33, %v334_v32 }
 0x272   :  { %409 = vst [vmem:[#allocation2] sm:$0xf] %v406_v35 }
 0x273   :  { %547 = shalt.err (!%p544_p4)
}
 0x274   :  { %s548_s3 = scalar_lea.hbm %s656_s4, 64 }
 0x275   :  { %p549_p5 = scmp.ne.s32.totalorder %s656_s4, %s548_s3  ;;  %p552_p6 = scmp.lt.u32.totalorder %s548_s3, %s656_s4 }
 0x277   :  { %p554_p7 = pnand %p552_p6, %p549_p5 }
 0x279   :  { %557 = shalt.err (!%p554_p7)
}
 0x27a   :  { %419 = dma.vmem_to_hbm [thread:$0]  %s417_s8, 64, %s656_s4, [#allocation3]  }
 0x27b   :  { %558 = dma.done.wait [#allocation3], 64  }
 0x27c   :  { %559 = vsyncadd [#allocation3], 4294967232 }
 0x27d   :  { %423 = vsyncpa [#allocation3], 1 }

</bundles_post_ra>
